<compile_context>
chip_gen: v7x
topology: tpu7x:2x2x1
jax: 0.10.0
libtpu: 0.0.40
codegen_flags: <defaults>
</compile_context>

<pallas_src>
import jax
import jax.numpy as jnp
from jax.experimental import pallas as pl
from jax.experimental.pallas import tpu as pltpu


def _round_up(v, m):
    return ((v + m - 1) // m) * m


def _cdiv(a, b):
    return (a + b - 1) // b


def _autoencoder_kernel(
    x_ref,
    w1_ref, b1_ref,
    w2_ref, b2_ref,
    w3_ref, b3_ref,
    w4_ref, b4_ref,
    out_ref,
):
    """One batch tile: 4x (bf16 matmul on MXU -> f32 acc -> +bias -> ReLU)."""

    def layer(a_bf16, w_ref, b_ref):
        acc = jnp.dot(a_bf16, w_ref[...], preferred_element_type=jnp.float32)
        return jnp.maximum(acc + b_ref[...], 0.0)            # f32 epilogue

    x = x_ref[...].astype(jnp.bfloat16)                      # f32 -> bf16 in-kernel
    h = layer(x, w1_ref, b1_ref).astype(jnp.bfloat16)        # encoder hidden
    c = layer(h, w2_ref, b2_ref).astype(jnp.bfloat16)        # encoder output (code)
    d = layer(c, w3_ref, b3_ref).astype(jnp.bfloat16)        # decoder hidden
    y = layer(d, w4_ref, b4_ref)                             # decoder output (f32 acc)
    out_ref[...] = y.astype(out_ref.dtype)                   # bf16 store


def _choose_batch_tiling(B, max_batch_tile):
    """TB multiple of 16, padding bounded, >=2 grid steps for big batches."""
    B16 = _round_up(max(B, 1), 16)
    n_tiles = max(_cdiv(B16, max_batch_tile), 1)
    # v7x has two TensorCores sharding the "parallel" batch axis: keep >=2
    # grid steps whenever each tile would still have >=256 rows.
    if n_tiles == 1 and B16 >= 512:
        n_tiles = 2
    TB = _round_up(_cdiv(B16, n_tiles), 16)
    B_pad = TB * n_tiles
    return TB, B_pad, n_tiles


def autoencoder_forward(x, params, *, max_batch_tile=2048, out_dtype=jnp.bfloat16):
    """x: (B, input_size) float32. params hold weights pre-transposed (in, out)."""
    B, F = x.shape
    H = params["w1"].shape[1]
    assert params["w4"].shape[1] == F

    H_pad = _round_up(H, 128)
    TB, B_pad, n_tiles = _choose_batch_tiling(B, max_batch_tile)

    def pad2(a, rows, cols, dtype):
        return jnp.pad(
            a, ((0, rows - a.shape[0]), (0, cols - a.shape[1]))).astype(dtype)

    # Weights as bf16 MXU operands; only the hidden dim is padded to 128.
    # The feature dim F stays unpadded (block last dim == full array dim), so
    # x and the output are streamed with no wrapper pad/cast/slice passes.
    w1 = pad2(params["w1"], F, H_pad, jnp.bfloat16)
    w2 = pad2(params["w2"], H_pad, H_pad, jnp.bfloat16)
    w3 = pad2(params["w3"], H_pad, H_pad, jnp.bfloat16)
    w4 = pad2(params["w4"], H_pad, F, jnp.bfloat16)
    b1 = pad2(params["b1"], 1, H_pad, jnp.float32)
    b2 = pad2(params["b2"], 1, H_pad, jnp.float32)
    b3 = pad2(params["b3"], 1, H_pad, jnp.float32)
    b4 = pad2(params["b4"], 1, F, jnp.float32)

    # Batch pad (if any) is < 16 * n_tiles rows since TB is derived from B;
    # most batch sizes hit B_pad == B and skip this copy entirely.
    xp = x if B_pad == B else jnp.pad(x, ((0, B_pad - B), (0, 0)))

    batch_in_spec = pl.BlockSpec((TB, F), lambda i: (i, 0))
    batch_out_spec = pl.BlockSpec((TB, F), lambda i: (i, 0))
    # Constant block index -> weights/biases stay VMEM-resident across steps.
    # (pl.Buffered(1) would drop their idle second buffer, ~100 KiB; left at
    # the default for broad lowering compatibility.)
    resident = lambda shape: pl.BlockSpec(shape, lambda i: (0, 0))

    flops = 2 * B_pad * (F * H_pad + 2 * H_pad * H_pad + H_pad * F)
    bytes_accessed = (
        B_pad * F * 4                                     # x (f32 in)
        + (w1.size + w2.size + w3.size + w4.size) * 2     # bf16 weights
        + (b1.size + b2.size + b3.size + b4.size) * 4     # f32 biases
        + B_pad * F * jnp.dtype(out_dtype).itemsize       # output writeback
    )

    out = pl.pallas_call(
        _autoencoder_kernel,
        out_shape=jax.ShapeDtypeStruct((B_pad, F), out_dtype),
        grid=(n_tiles,),
        in_specs=[
            batch_in_spec,
            resident((F, H_pad)), resident((1, H_pad)),
            resident((H_pad, H_pad)), resident((1, H_pad)),
            resident((H_pad, H_pad)), resident((1, H_pad)),
            resident((H_pad, F)), resident((1, F)),
        ],
        out_specs=batch_out_spec,
        compiler_params=pltpu.CompilerParams(
            dimension_semantics=("parallel",),
            vmem_limit_bytes=32 * 1024 * 1024,
        ),
        cost_estimate=pl.CostEstimate(
            flops=flops, transcendentals=0, bytes_accessed=bytes_accessed),
    )(
        xp,
        w1, b1,
        w2, b2,
        w3, b3,
        w4, b4,
    )

    return out if B_pad == B else out[:B]


def init_params(key, input_size, hidden_size):
    """PyTorch-style U(-1/sqrt(fan_in), 1/sqrt(fan_in)) init.

    Weights are stored pre-transposed as (in, out); biases as (1, out)."""
    ks = jax.random.split(key, 8)

    def linear(kw, kb, fan_in, fan_out):
        bound = 1.0 / jnp.sqrt(float(fan_in))
        w = jax.random.uniform(kw, (fan_in, fan_out), jnp.float32, -bound, bound)
        b = jax.random.uniform(kb, (1, fan_out), jnp.float32, -bound, bound)
        return w, b

    w1, b1 = linear(ks[0], ks[1], input_size, hidden_size)
    w2, b2 = linear(ks[2], ks[3], hidden_size, hidden_size)
    w3, b3 = linear(ks[4], ks[5], hidden_size, hidden_size)
    w4, b4 = linear(ks[6], ks[7], hidden_size, input_size)
    return {"w1": w1, "b1": b1, "w2": w2, "b2": b2,
            "w3": w3, "b3": b3, "w4": w4, "b4": b4}


def _reference(x, p):
    relu = lambda v: jnp.maximum(v, 0.0)
    h = relu(x @ p["w1"] + p["b1"])
    c = relu(h @ p["w2"] + p["b2"])
    d = relu(c @ p["w3"] + p["b3"])
    return relu(d @ p["w4"] + p["b4"])


if __name__ == "__main__":
    key = jax.random.PRNGKey(0)
    k_p, k_x1, k_x2, k_x3 = jax.random.split(key, 4)

    input_size = 64
    hidden_size = 32
    params = init_params(k_p, input_size, hidden_size)

    def check(x):
        out = jax.block_until_ready(autoencoder_forward(x, params))
        ref = _reference(x, params)
        assert out.shape == x.shape
        # bf16 operands + bf16 output, f32 accumulation -> loose tolerance.
        assert jnp.allclose(out.astype(jnp.float32), ref, atol=4e-2, rtol=4e-2)

    # Small batch: single 16-row tile (batch padded 8 -> 16 inside wrapper).
    check(jax.random.normal(k_x1, (8, input_size), dtype=jnp.float32))
    # Odd batch: one 272-row tile, no batch padding, no post-kernel slice.
    check(jax.random.normal(k_x2, (272, input_size), dtype=jnp.float32))
    # Larger batch: 2 grid steps (megacore-friendly), TB derived from B.
    check(jax.random.normal(k_x3, (600, input_size), dtype=jnp.float32))

    print("KERNEL_OK")
</pallas_src>

<mosaic_0001>
module attributes {stable_mosaic.version = 11 : i64} {
  func.func @_autoencoder_kernel(%arg0: i32, %arg1: memref<16x64xf32, #tpu.memory_space<vmem>>, %arg2: memref<64x128xbf16, #tpu.memory_space<vmem>>, %arg3: memref<1x128xf32, #tpu.memory_space<vmem>>, %arg4: memref<128x128xbf16, #tpu.memory_space<vmem>>, %arg5: memref<1x128xf32, #tpu.memory_space<vmem>>, %arg6: memref<128x128xbf16, #tpu.memory_space<vmem>>, %arg7: memref<1x128xf32, #tpu.memory_space<vmem>>, %arg8: memref<128x64xbf16, #tpu.memory_space<vmem>>, %arg9: memref<1x64xf32, #tpu.memory_space<vmem>>, %arg10: memref<16x64xbf16, #tpu.memory_space<vmem>>) attributes {dimension_semantics = [#tpu.dimension_semantics<parallel>], iteration_bounds = array<i64: 1>, scalar_prefetch = 0 : i64, scratch_operands = 0 : i64, tpu.core_type = #tpu.core_type<tc>, window_params = [{transform_indices = @transform_0, window_bounds = array<i64: 16, 64>}, {pipeline_mode = #tpu.pipeline_mode<synchronous>, transform_indices = @transform_1, window_bounds = array<i64: 64, 128>}, {pipeline_mode = #tpu.pipeline_mode<synchronous>, transform_indices = @transform_2, window_bounds = array<i64: 1, 128>}, {pipeline_mode = #tpu.pipeline_mode<synchronous>, transform_indices = @transform_3, window_bounds = array<i64: 128, 128>}, {pipeline_mode = #tpu.pipeline_mode<synchronous>, transform_indices = @transform_4, window_bounds = array<i64: 1, 128>}, {pipeline_mode = #tpu.pipeline_mode<synchronous>, transform_indices = @transform_5, window_bounds = array<i64: 128, 128>}, {pipeline_mode = #tpu.pipeline_mode<synchronous>, transform_indices = @transform_6, window_bounds = array<i64: 1, 128>}, {pipeline_mode = #tpu.pipeline_mode<synchronous>, transform_indices = @transform_7, window_bounds = array<i64: 128, 64>}, {pipeline_mode = #tpu.pipeline_mode<synchronous>, transform_indices = @transform_8, window_bounds = array<i64: 1, 64>}, {transform_indices = @transform_9, window_bounds = array<i64: 16, 64>}]} {
    %c0 = arith.constant 0 : index
    %c0_0 = arith.constant 0 : index
    %0 = vector.load %arg1[%c0, %c0_0] : memref<16x64xf32, #tpu.memory_space<vmem>>, vector<16x64xf32>
    %1 = arith.truncf %0 : vector<16x64xf32> to vector<16x64xbf16>
    %c0_1 = arith.constant 0 : index
    %c0_2 = arith.constant 0 : index
    %2 = vector.load %arg2[%c0_1, %c0_2] : memref<64x128xbf16, #tpu.memory_space<vmem>>, vector<64x128xbf16>
    %cst = arith.constant dense<0.000000e+00> : vector<16x128xf32>
    %3 = tpu.matmul %1, %2, %cst {dimension_numbers = #tpu.dot_dimension_numbers<[1], [0], [0], [1], [0, 0, 1, 1], [], []>} : vector<16x64xbf16>, vector<64x128xbf16>, vector<16x128xf32> -> vector<16x128xf32>
    %c0_3 = arith.constant 0 : index
    %c0_4 = arith.constant 0 : index
    %4 = vector.load %arg3[%c0_3, %c0_4] : memref<1x128xf32, #tpu.memory_space<vmem>>, vector<1x128xf32>
    %5 = vector.broadcast %4 : vector<1x128xf32> to vector<16x128xf32>
    %6 = arith.addf %3, %5 : vector<16x128xf32>
    %cst_5 = arith.constant 0.000000e+00 : f32
    %7 = vector.broadcast %cst_5 : f32 to vector<16x128xf32>
    %8 = arith.maximumf %6, %7 : vector<16x128xf32>
    %9 = arith.truncf %8 : vector<16x128xf32> to vector<16x128xbf16>
    %c0_6 = arith.constant 0 : index
    %c0_7 = arith.constant 0 : index
    %10 = vector.load %arg4[%c0_6, %c0_7] : memref<128x128xbf16, #tpu.memory_space<vmem>>, vector<128x128xbf16>
    %cst_8 = arith.constant dense<0.000000e+00> : vector<16x128xf32>
    %11 = tpu.matmul %9, %10, %cst_8 {dimension_numbers = #tpu.dot_dimension_numbers<[1], [0], [0], [1], [0, 0, 1, 1], [], []>} : vector<16x128xbf16>, vector<128x128xbf16>, vector<16x128xf32> -> vector<16x128xf32>
    %c0_9 = arith.constant 0 : index
    %c0_10 = arith.constant 0 : index
    %12 = vector.load %arg5[%c0_9, %c0_10] : memref<1x128xf32, #tpu.memory_space<vmem>>, vector<1x128xf32>
    %13 = vector.broadcast %12 : vector<1x128xf32> to vector<16x128xf32>
    %14 = arith.addf %11, %13 : vector<16x128xf32>
    %cst_11 = arith.constant 0.000000e+00 : f32
    %15 = vector.broadcast %cst_11 : f32 to vector<16x128xf32>
    %16 = arith.maximumf %14, %15 : vector<16x128xf32>
    %17 = arith.truncf %16 : vector<16x128xf32> to vector<16x128xbf16>
    %c0_12 = arith.constant 0 : index
    %c0_13 = arith.constant 0 : index
    %18 = vector.load %arg6[%c0_12, %c0_13] : memref<128x128xbf16, #tpu.memory_space<vmem>>, vector<128x128xbf16>
    %cst_14 = arith.constant dense<0.000000e+00> : vector<16x128xf32>
    %19 = tpu.matmul %17, %18, %cst_14 {dimension_numbers = #tpu.dot_dimension_numbers<[1], [0], [0], [1], [0, 0, 1, 1], [], []>} : vector<16x128xbf16>, vector<128x128xbf16>, vector<16x128xf32> -> vector<16x128xf32>
    %c0_15 = arith.constant 0 : index
    %c0_16 = arith.constant 0 : index
    %20 = vector.load %arg7[%c0_15, %c0_16] : memref<1x128xf32, #tpu.memory_space<vmem>>, vector<1x128xf32>
    %21 = vector.broadcast %20 : vector<1x128xf32> to vector<16x128xf32>
    %22 = arith.addf %19, %21 : vector<16x128xf32>
    %cst_17 = arith.constant 0.000000e+00 : f32
    %23 = vector.broadcast %cst_17 : f32 to vector<16x128xf32>
    %24 = arith.maximumf %22, %23 : vector<16x128xf32>
    %25 = arith.truncf %24 : vector<16x128xf32> to vector<16x128xbf16>
    %c0_18 = arith.constant 0 : index
    %c0_19 = arith.constant 0 : index
    %26 = vector.load %arg8[%c0_18, %c0_19] : memref<128x64xbf16, #tpu.memory_space<vmem>>, vector<128x64xbf16>
    %cst_20 = arith.constant dense<0.000000e+00> : vector<16x64xf32>
    %27 = tpu.matmul %25, %26, %cst_20 {dimension_numbers = #tpu.dot_dimension_numbers<[1], [0], [0], [1], [0, 0, 1, 1], [], []>} : vector<16x128xbf16>, vector<128x64xbf16>, vector<16x64xf32> -> vector<16x64xf32>
    %c0_21 = arith.constant 0 : index
    %c0_22 = arith.constant 0 : index
    %28 = vector.load %arg9[%c0_21, %c0_22] : memref<1x64xf32, #tpu.memory_space<vmem>>, vector<1x64xf32>
    %29 = vector.broadcast %28 : vector<1x64xf32> to vector<16x64xf32>
    %30 = arith.addf %27, %29 : vector<16x64xf32>
    %cst_23 = arith.constant 0.000000e+00 : f32
    %31 = vector.broadcast %cst_23 : f32 to vector<16x64xf32>
    %32 = arith.maximumf %30, %31 : vector<16x64xf32>
    %33 = arith.truncf %32 : vector<16x64xf32> to vector<16x64xbf16>
    %c0_24 = arith.constant 0 : index
    %c0_25 = arith.constant 0 : index
    %34 = vector.load %arg10[%c0_24, %c0_25] : memref<16x64xbf16, #tpu.memory_space<vmem>>, vector<16x64xbf16>
    tpu.vector_store %arg10[%c0_24, %c0_25], %33 {strides = array<i32>} : memref<16x64xbf16, #tpu.memory_space<vmem>>, vector<16x64xbf16>,
    return
  }
  func.func @transform_0(%arg0: i32) -> (i32, i32) {
    %c0_i32 = arith.constant 0 : i32
    %c0_i32_0 = arith.constant 0 : i32
    return %arg0, %c0_i32 : i32, i32
  }
  func.func @transform_1(%arg0: i32) -> (i32, i32) {
    %c0_i32 = arith.constant 0 : i32
    %c0_i32_0 = arith.constant 0 : i32
    %c0_i32_1 = arith.constant 0 : i32
    return %c0_i32, %c0_i32_0 : i32, i32
  }
  func.func @transform_2(%arg0: i32) -> (i32, i32) {
    %c0_i32 = arith.constant 0 : i32
    %c0_i32_0 = arith.constant 0 : i32
    %c0_i32_1 = arith.constant 0 : i32
    return %c0_i32, %c0_i32_0 : i32, i32
  }
  func.func @transform_3(%arg0: i32) -> (i32, i32) {
    %c0_i32 = arith.constant 0 : i32
    %c0_i32_0 = arith.constant 0 : i32
    %c0_i32_1 = arith.constant 0 : i32
    return %c0_i32, %c0_i32_0 : i32, i32
  }
  func.func @transform_4(%arg0: i32) -> (i32, i32) {
    %c0_i32 = arith.constant 0 : i32
    %c0_i32_0 = arith.constant 0 : i32
    %c0_i32_1 = arith.constant 0 : i32
    return %c0_i32, %c0_i32_0 : i32, i32
  }
  func.func @transform_5(%arg0: i32) -> (i32, i32) {
    %c0_i32 = arith.constant 0 : i32
    %c0_i32_0 = arith.constant 0 : i32
    %c0_i32_1 = arith.constant 0 : i32
    return %c0_i32, %c0_i32_0 : i32, i32
  }
  func.func @transform_6(%arg0: i32) -> (i32, i32) {
    %c0_i32 = arith.constant 0 : i32
    %c0_i32_0 = arith.constant 0 : i32
    %c0_i32_1 = arith.constant 0 : i32
    return %c0_i32, %c0_i32_0 : i32, i32
  }
  func.func @transform_7(%arg0: i32) -> (i32, i32) {
    %c0_i32 = arith.constant 0 : i32
    %c0_i32_0 = arith.constant 0 : i32
    %c0_i32_1 = arith.constant 0 : i32
    return %c0_i32, %c0_i32_0 : i32, i32
  }
  func.func @transform_8(%arg0: i32) -> (i32, i32) {
    %c0_i32 = arith.constant 0 : i32
    %c0_i32_0 = arith.constant 0 : i32
    %c0_i32_1 = arith.constant 0 : i32
    return %c0_i32, %c0_i32_0 : i32, i32
  }
  func.func @transform_9(%arg0: i32) -> (i32, i32) {
    %c0_i32 = arith.constant 0 : i32
    %c0_i32_0 = arith.constant 0 : i32
    return %arg0, %c0_i32 : i32, i32
  }
}

</mosaic_0001>

<bundles_post_ra>
// kernel: tpu_custom_call.1
= control target key start
LH: loop header
LB: loop body
LE: loop exit
PB: predicated region body
PF: predicated region fallthrough
CT: control target
= control target key end

     0   :  { %14 = vsyncpa [#allocation3], 0  ;;  %s984_s0 = inlined_call_operand.hbm [shape: f32[16,64], index: 0, kind: input, shape index: {}]   ;;  %s985_s1 = inlined_call_operand.vmem [shape: bf16[64,128], index: 1, kind: input, shape index: {}]   ;;  %s986_s2 = inlined_call_operand.vmem [shape: f32[1,128], index: 2, kind: input, shape index: {}]   ;;  %s987_s3 = inlined_call_operand.vmem [shape: bf16[128,128], index: 3, kind: input, shape index: {}]   ;;  %s988_s4 = inlined_call_operand.vmem [shape: f32[1,128], index: 4, kind: input, shape index: {}]   ;;  %s989_s5 = inlined_call_operand.hbm [shape: bf16[128,128], index: 5, kind: input, shape index: {}]   ;;  %s990_s6 = inlined_call_operand.vmem [shape: f32[1,128], index: 6, kind: input, shape index: {}]   ;;  %s991_s7 = inlined_call_operand.vmem [shape: bf16[128,64], index: 7, kind: input, shape index: {}]   ;;  %s992_s8 = inlined_call_operand.vmem [shape: f32[1,64], index: 8, kind: input, shape index: {}]   ;;  %s993_s9 = inlined_call_operand.hbm [shape: bf16[16,64], index: 9, kind: output, shape index: {}]  }
   0x1   :  { %15 = vsyncpa [#allocation6], 0 }
   0x2   :  { %16 = vsyncpa [#allocation4], 0  ;;  %s775_s30 = smov [#allocation2]   ;;  %s703_s13 = scalar_lea.hbm %s984_s0, 256 }
   0x3   :  { %s22_s10 = sshll.u32 %s775_s30, 4  ;;  %p704_p0 = scmp.ne.s32.totalorder %s984_s0, %s703_s13  ;;  %s23_s10 = int_to_ptr.vmem [resolvable:$true] %s22_s10 }
   0x4   :  { %p707_p1 = scmp.lt.u32.totalorder %s703_s13, %s984_s0 }
   0x6   :  { %p709_p2 = pnand %p707_p1, %p704_p0 }
   0x8   :  { %712 = shalt.err (!%p709_p2)
}
   0x9   :  { %s713_s18 = scalar_lea.vmem %s23_s10, 256  ;;  %p718_p4 = scmp.lt.s32.totalorder %s23_s10, %s23_s10 }
   0xa   :  { %p714_p3 = scmp.ne.s32.totalorder %s23_s10, %s713_s18  ;;  %p719_p5 = scmp.lt.s32.totalorder %s713_s18, %s713_s18 }
   0xc   :  { %p720_p6 = por %p719_p5, %p718_p4 }
   0xe   :  { %p721_p7 = pnand %p720_p6, %p714_p3 }
  0x10   :  { %724 = shalt.err (!%p721_p7)
}
  0x11   :  { %s776_s19 = smov 128   ;;  %s777_s20 = smov 8  }
  0x12   :  { %28 = dma.hbm_to_vmem [thread:$0]  %s984_s0, 256, %s23_s10, [#allocation3], %s776_s19, %s776_s19, %s777_s20  }
  0x13   :  { %s778_s23 = smov [#allocation5]   ;;  %s725_s27 = scalar_lea.hbm %s989_s5, 1024 }
  0x14   :  { %s42_s24 = sshll.u32 %s778_s23, 4  ;;  %p726_p8 = scmp.ne.s32.totalorder %s989_s5, %s725_s27  ;;  %s43_s24 = int_to_ptr.vmem [resolvable:$true] %s42_s24 }
  0x15   :  { %p729_p9 = scmp.lt.u32.totalorder %s725_s27, %s989_s5 }
  0x17   :  { %p731_p10 = pnand %p729_p9, %p726_p8 }
  0x19   :  { %734 = shalt.err (!%p731_p10)
}
  0x1a   :  { %s735_s12 = scalar_lea.vmem %s43_s24, 1024  ;;  %p740_p12 = scmp.lt.s32.totalorder %s43_s24, %s43_s24 }
  0x1b   :  { %p736_p11 = scmp.ne.s32.totalorder %s43_s24, %s735_s12  ;;  %p741_p13 = scmp.lt.s32.totalorder %s735_s12, %s735_s12 }
  0x1d   :  { %p742_p0 = por %p741_p13, %p740_p12 }
  0x1f   :  { %p743_p1 = pnand %p742_p0, %p736_p11 }
  0x21   :  { %746 = shalt.err (!%p743_p1)
}
  0x22   :  { %s779_s0 = smov 64   ;;  %s780_s10 = smov 4  }
  0x23   :  { %48 = dma.hbm_to_vmem [thread:$0]  %s989_s5, 1024, %s43_s24, [#allocation6], %s779_s0, %s779_s0, %s780_s10  }
  0x24   :  { %769 = dma.done.wait [#allocation3], 256  }
  0x25   :  { %770 = vsyncadd [#allocation3], 4294967040 }
  0x26   :  { %771 = dma.done.wait [#allocation6], 1024  }
  0x27   :  { %772 = vsyncadd [#allocation6], 4294966272  ;;  %v781_v0 = vmov 0.0   ;;  %vm782_vm0 = vmmov 0   ;;  %v675_v1 = vld [vmem:[%s985_s1] sm:$0xff]   ;;  %v676_v2 = vld [vmem:[%s985_s1 + $0x8] sm:$0xff]  }
  0x28   :  { %594 = vmatprep.subr.bf16.mxu0 %v781_v0  ;;  %602 = vmatprep.mubr.msk.bf16.mxu0 %vm782_vm0, %v781_v0  ;;  %v679_v3 = vld [vmem:[%s987_s3] sm:$0xff]   ;;  %v677_v4 = vld [vmem:[%s985_s1 + $0x10] sm:$0xff]   ;;  %v680_v5 = vld [vmem:[%s987_s3 + $0x8] sm:$0xff]   ;;  %vm104_vm1 = vcmask 523264   ;;  %vm504_vm2 = vcmask 519168  }
  0x29   :  { %606 = vmatprep.subr.bf16.mxu1 %v781_v0  ;;  %622 = vmatprep.mubr.msk.bf16.mxu1 %vm782_vm0, %v781_v0  ;;  %v678_v6 = vld [vmem:[%s985_s1 + $0x18] sm:$0xff]   ;;  %v62_v7 = vld [vmem:[#allocation2] sm:$0xff]  ;;  %v63_v8 = vld [vmem:[#allocation2 + $0x8] sm:$0xff] }
  0x2a   :  { %595 = vmatpush3.bf16.msra.mxu0 %v675_v1  ;;  %607 = vmatpush3.bf16.msra.mxu1 %v679_v3  ;;  %v681_v9 = vld [vmem:[%s987_s3 + $0x10] sm:$0xff]   ;;  %v64_v10 = vpack.c.bf16 %v63_v8, %v62_v7  ;;  %v682_v11 = vld [vmem:[%s987_s3 + $0x18] sm:$0xff]   ;;  %v683_v12 = vld [vmem:[%s987_s3 + $0x20] sm:$0xff]  }
  0x2b   :  { %596 = vmatprep.subr.bf16.mxu0 %v781_v0  ;;  %608 = vmatprep.subr.bf16.mxu1 %v781_v0  ;;  %v684_v13 = vld [vmem:[%s987_s3 + $0x28] sm:$0xff]   ;;  %v685_v14 = vld [vmem:[%s987_s3 + $0x30] sm:$0xff]   ;;  %v686_v15 = vld [vmem:[%s987_s3 + $0x38] sm:$0xff]  }
  0x2c   :  { %v687_v16 = vld [vmem:[#allocation5] sm:$0xff]   ;;  %v688_v17 = vld [vmem:[#allocation5 + $0x8] sm:$0xff]   ;;  %v689_v18 = vld [vmem:[#allocation5 + $0x10] sm:$0xff]  }
  0x2d   :  { %v690_v19 = vld [vmem:[#allocation5 + $0x18] sm:$0xff]   ;;  %v691_v20 = vld [vmem:[#allocation5 + $0x20] sm:$0xff]   ;;  %v692_v21 = vld [vmem:[#allocation5 + $0x28] sm:$0xff]  }
  0x2e   :  { %597 = vmatpush3.bf16.msra.mxu0 %v676_v2  ;;  %609 = vmatpush3.bf16.msra.mxu1 %v680_v5  ;;  %v525_v22 = vld [vmem:[%s986_s2] ss:$0 sm:$0xff]  ;;  %v694_v33 = vld [vmem:[#allocation5 + $0x38] sm:$0xff]   ;;  %v697_v36 = vld [vmem:[%s991_s7 + $0x10] sm:$0xff]  }
  0x2f   :  { %598 = vmatprep.subr.bf16.mxu0 %v781_v0  ;;  %610 = vmatprep.subr.bf16.mxu1 %v781_v0  ;;  %v693_v32 = vld [vmem:[#allocation5 + $0x30] sm:$0xff]   ;;  %v696_v35 = vld [vmem:[%s991_s7 + $0x8] sm:$0xff]   ;;  %v698_v37 = vld [vmem:[%s991_s7 + $0x18] sm:$0xff]  }
  0x30   :  { %v695_v34 = vld [vmem:[%s991_s7] sm:$0xff]   ;;  %v700_v39 = vld [vmem:[%s991_s7 + $0x28] sm:$0xff]   ;;  %v701_v50 = vld [vmem:[%s991_s7 + $0x30] sm:$0xff]  }
  0x31   :  { %v699_v38 = vld [vmem:[%s991_s7 + $0x20] sm:$0xff]   ;;  %v702_v51 = vld [vmem:[%s991_s7 + $0x38] sm:$0xff]  }
  0x32   :  { %599 = vmatpush3.bf16.msra.mxu0 %v677_v4  ;;  %611 = vmatpush3.bf16.msra.mxu1 %v681_v9  ;;  %v531_v40 = vld [vmem:[%s988_s4] ss:$0 sm:$0xff] }
  0x33   :  { %600 = vmatprep.subr.bf16.mxu0 %v781_v0  ;;  %612 = vmatprep.subr.bf16.mxu1 %v781_v0  ;;  %v540_v52 = vld [vmem:[%s990_s6] ss:$0 sm:$0xff]  ;;  %s783_s6 = smov [#allocation7]  }
  0x34   :  { %v549_v62 = vld [vmem:[%s992_s8] ss:$0 sm:$0xff]  ;;  %s512_s7 = sshll.u32 %s783_s6, 4  ;;  %s513_s7 = int_to_ptr.vmem [resolvable:$true] %s512_s7 }
  0x35   :  { %s747_s16 = scalar_lea.vmem %s513_s7, 128  ;;  %p752_p3 = scmp.lt.s32.totalorder %s513_s7, %s513_s7 }
  0x36   :  { %601 = vmatpush3.bf16.msra.mxu0 %v678_v6  ;;  %613 = vmatpush3.bf16.msra.mxu1 %v682_v11  ;;  %p748_p2 = scmp.ne.s32.totalorder %s513_s7, %s747_s16  ;;  %p753_p4 = scmp.lt.s32.totalorder %s747_s16, %s747_s16 }
  0x37   :  { %626 = vmatprep.subr.bf16.mxu0 %v781_v0  ;;  %614 = vmatprep.subr.bf16.mxu1 %v781_v0 }
  0x38   :  { %p754_p5 = por %p753_p4, %p752_p3 }
  0x39   :  { %603 = vmatmul.mubr.msk.bf16.vlgmr.msra.gmra.mrb[0].mxu0 %vm104_vm1, %v64_v10 }
  0x3a   :  { %642 = vmatprep.mubr.msk.bf16.mxu0 %vm782_vm0, %v781_v0  ;;  %615 = vmatpush3.bf16.msra.mxu1 %v683_v12  ;;  %p755_p6 = pnand %p754_p5, %p748_p2 }
  0x3b   :  { %616 = vmatprep.subr.bf16.mxu1 %v781_v0  ;;  %627 = vmatpush3.bf16.msra.mxu0 %v687_v16 }
  0x3c   :  { %628 = vmatprep.subr.bf16.mxu0 %v781_v0 }
  0x3e   :  { %617 = vmatpush3.bf16.msra.mxu1 %v684_v13 }
  0x3f   :  { %618 = vmatprep.subr.bf16.mxu1 %v781_v0  ;;  %629 = vmatpush3.bf16.msra.mxu0 %v688_v17 }
  0x40   :  { %630 = vmatprep.subr.bf16.mxu0 %v781_v0 }
  0x42   :  { %619 = vmatpush3.bf16.msra.mxu1 %v685_v14 }
  0x43   :  { %620 = vmatprep.subr.bf16.mxu1 %v781_v0  ;;  %631 = vmatpush3.bf16.msra.mxu0 %v689_v18 }
  0x44   :  { %632 = vmatprep.subr.bf16.mxu0 %v781_v0 }
  0x46   :  { %621 = vmatpush3.bf16.msra.mxu1 %v686_v15 }
  0x47   :  { %646 = vmatprep.subr.bf16.mxu1 %v781_v0  ;;  %633 = vmatpush3.bf16.msra.mxu0 %v690_v19 }
  0x48   :  { %634 = vmatprep.subr.bf16.mxu0 %v781_v0 }
  0x4b   :  { %635 = vmatpush3.bf16.msra.mxu0 %v691_v20 }
  0x4c   :  { %636 = vmatprep.subr.bf16.mxu0 %v781_v0 }
  0x4f   :  { %637 = vmatpush3.bf16.msra.mxu0 %v692_v21 }
  0x50   :  { %638 = vmatprep.subr.bf16.mxu0 %v781_v0 }
  0x53   :  { %639 = vmatpush3.bf16.msra.mxu0 %v693_v32 }
  0x54   :  { %640 = vmatprep.subr.bf16.mxu0 %v781_v0 }
  0x57   :  { %641 = vmatpush3.bf16.msra.mxu0 %v694_v33 }
 0x10c   :  { %v142_v23 = vpop.f32.mrb[0].mxu0 }
 0x10d   :  { %v143_v24 = vadd.f32 %v525_v22, %v142_v23  ;;  %v604_v25 = vpop.f32.mrb[1].mxu0 }
 0x10e   :  { %v145_v26 = vpop.f32.mrb[2].mxu0 }
 0x10f   :  { %v146_v27 = vadd.f32 %v525_v22, %v145_v26  ;;  %v605_v28 = vpop.f32.mrb[3].mxu0  ;;  %v149_v29 = vmax.f32 %v143_v24, 0.0 }
 0x111   :  { %v150_v30 = vmax.f32 %v146_v27, 0.0 }
 0x113   :  { %v151_v31 = vpack.c.bf16 %v150_v30, %v149_v29 }
 0x115   :  { %623 = vmatmul.mubr.bf16.vlgmr.msra.gmra.mrb[0].mxu1 %v151_v31 }
 0x116   :  { %662 = vmatprep.mubr.msk.bf16.mxu1 %vm782_vm0, %v781_v0  ;;  %647 = vmatpush3.bf16.msra.mxu1 %v695_v34 }
 0x117   :  { %648 = vmatprep.subr.bf16.mxu1 %v781_v0 }
 0x11a   :  { %649 = vmatpush3.bf16.msra.mxu1 %v696_v35 }
 0x11b   :  { %650 = vmatprep.subr.bf16.mxu1 %v781_v0 }
 0x11e   :  { %651 = vmatpush3.bf16.msra.mxu1 %v697_v36 }
 0x11f   :  { %652 = vmatprep.subr.bf16.mxu1 %v781_v0 }
 0x122   :  { %653 = vmatpush3.bf16.msra.mxu1 %v698_v37 }
 0x123   :  { %654 = vmatprep.subr.bf16.mxu1 %v781_v0 }
 0x126   :  { %655 = vmatpush3.bf16.msra.mxu1 %v699_v38 }
 0x127   :  { %656 = vmatprep.subr.bf16.mxu1 %v781_v0 }
 0x12a   :  { %657 = vmatpush3.bf16.msra.mxu1 %v700_v39 }
 0x12b   :  { %658 = vmatprep.subr.bf16.mxu1 %v781_v0 }
 0x12e   :  { %659 = vmatpush3.bf16.msra.mxu1 %v701_v50 }
 0x12f   :  { %660 = vmatprep.subr.bf16.mxu1 %v781_v0 }
 0x132   :  { %661 = vmatpush3.bf16.msra.mxu1 %v702_v51 }
 0x1e8   :  { %v257_v41 = vpop.f32.mrb[0].mxu1 }
 0x1e9   :  { %v258_v42 = vadd.f32 %v531_v40, %v257_v41  ;;  %v624_v43 = vpop.f32.mrb[1].mxu1 }
 0x1ea   :  { %v260_v44 = vpop.f32.mrb[2].mxu1 }
 0x1eb   :  { %v261_v45 = vadd.f32 %v531_v40, %v260_v44  ;;  %v625_v46 = vpop.f32.mrb[3].mxu1  ;;  %v264_v47 = vmax.f32 %v258_v42, 0.0 }
 0x1ed   :  { %v265_v48 = vmax.f32 %v261_v45, 0.0 }
 0x1ef   :  { %v266_v49 = vpack.c.bf16 %v265_v48, %v264_v47 }
 0x1f1   :  { %643 = vmatmul.mubr.bf16.vlgmr.msra.gmra.mrb[4].mxu0 %v266_v49 }
 0x2c4   :  { %v372_v53 = vpop.f32.mrb[4].mxu0 }
 0x2c5   :  { %v373_v54 = vadd.f32 %v540_v52, %v372_v53  ;;  %v644_v55 = vpop.f32.mrb[5].mxu0 }
 0x2c6   :  { %v375_v56 = vpop.f32.mrb[6].mxu0 }
 0x2c7   :  { %v376_v57 = vadd.f32 %v540_v52, %v375_v56  ;;  %v645_v58 = vpop.f32.mrb[7].mxu0  ;;  %v379_v59 = vmax.f32 %v373_v54, 0.0 }
 0x2c9   :  { %v380_v60 = vmax.f32 %v376_v57, 0.0 }
 0x2cb   :  { %v381_v61 = vpack.c.bf16 %v380_v60, %v379_v59 }
 0x2cd   :  { %663 = vmatmul.mubr.bf16.vlgmr.msra.gmra.mrb[4].mxu1 %v381_v61 }
 0x3a0   :  { %v487_v63 = vpop.f32.mrb[4].mxu1 }
 0x3a1   :  { %v488_v0 = vadd.f32 %v549_v62, %v487_v63  ;;  %v664_v1 = vpop.f32.mrb[5].mxu1 }
 0x3a2   :  { %v490_v2 = vpop.f32.mrb[6].mxu1 }
 0x3a3   :  { %v494_v3 = vmax.f32 %v488_v0, 0.0  ;;  %v491_v4 = vadd.f32 %v549_v62, %v490_v2  ;;  %v665_v5 = vpop.f32.mrb[7].mxu1 }
 0x3a5   :  { %v560_v6 = vpack.c.bf16 %v494_v3, %v494_v3  ;;  %v495_v7 = vmax.f32 %v491_v4, 0.0 }
 0x3a7   :  { %v561_v8 = vpack.c.bf16 %v495_v7, %v495_v7  ;;  %505 = vst.msk [vmem:[#allocation7] sm:$0xf] %vm504_vm2, %v560_v6 }
 0x3a9   :  { %506 = vst.msk [vmem:[#allocation7 + $0x4] sm:$0xf] %vm504_vm2, %v561_v8 }
 0x3aa   :  { %758 = shalt.err (!%p755_p6)
}
 0x3ab   :  { %s759_s5 = scalar_lea.hbm %s993_s9, 128 }
 0x3ac   :  { %p760_p7 = scmp.ne.s32.totalorder %s993_s9, %s759_s5  ;;  %p763_p8 = scmp.lt.u32.totalorder %s759_s5, %s993_s9 }
 0x3ae   :  { %p765_p9 = pnand %p763_p8, %p760_p7 }
 0x3b0   :  { %768 = shalt.err (!%p765_p9)
}
 0x3b1   :  { %518 = dma.vmem_to_hbm [thread:$0]  %s513_s7, 128, %s993_s9, [#allocation4], %s779_s0, %s779_s0, %s780_s10  }
 0x3b2   :  { %773 = dma.done.wait [#allocation4], 128  }
 0x3b3   :  { %774 = vsyncadd [#allocation4], 4294967168 }
 0x3b4   :  { %522 = vsyncpa [#allocation3], 1 }
 0x3b5   :  { %523 = vsyncpa [#allocation6], 1 }
 0x3b6   :  { %524 = vsyncpa [#allocation4], 1 }

</bundles_post_ra>
